<compile_context>
chip_gen: v7x
topology: tpu7x:2x2x1
jax: 0.10.0
libtpu: 0.0.40
codegen_flags: <defaults>
</compile_context>

<pallas_src>
import jax
import jax.numpy as jnp
from jax.experimental import pallas as pl
from jax.experimental.pallas import tpu as pltpu


def _round_up(v, m):
    return ((v + m - 1) // m) * m


# ----------------------------- Pallas kernel ------------------------------ #
def _gcn_score_kernel(w_ref, xt_ref, at_ref, b_ref, o_ref):
    # w_ref : (8, C)       f32  weight row replicated to a full sublane tile
    # xt_ref: (C, N_pad)   f32  node features, transposed (resident in VMEM)
    # at_ref: (N_pad, tn)  bf16 column tile of A_hat^T (the streamed tensor)
    # b_ref : (1,)         f32  bias scalar, in SMEM
    # o_ref : (1, tn)      f32  lane-dense score tile
    xw = jnp.dot(w_ref[...], xt_ref[...],
                 preferred_element_type=jnp.float32)        # (8, N_pad), rows identical
    s = jnp.dot(xw.astype(jnp.bfloat16), at_ref[...],
                preferred_element_type=jnp.float32)         # (8, tn), f32 MXU accum
    o_ref[...] = s[0:1, :] + b_ref[0]


# ------------------------------ JAX glue ----------------------------------- #
def build_normalized_adjacency_T(edge_index, num_nodes):
    """Transposed dense normalized adjacency A_hat^T (PyG gcn_norm defaults).

    A[dst, src] accumulates weight 1 for every src != dst edge (duplicates sum,
    matching scatter_add); add_remaining_self_loops => exactly one self-loop of
    weight 1 per node; degree over the target (dst) index.  Returned transposed
    so the kernel tiles the *output* axis along lanes.
    """
    src, dst = edge_index[0], edge_index[1]
    w = jnp.where(src != dst, 1.0, 0.0)                       # drop existing self-loops
    a_t = jnp.zeros((num_nodes, num_nodes), jnp.float32).at[src, dst].add(w)
    idx = jnp.arange(num_nodes)
    a_t = a_t.at[idx, idx].set(1.0)                           # one self-loop, weight 1
    deg = jnp.sum(a_t, axis=0)                                # deg[i] = sum_src A[i, src]
    d_inv_sqrt = jnp.where(deg > 0, 1.0 / jnp.sqrt(deg), 0.0)
    return d_inv_sqrt[:, None] * a_t * d_inv_sqrt[None, :]    # A_hat^T


def _choose_col_tile(n_pad, itemsize, max_tile_bytes):
    """Largest 128-multiple dividing n_pad with n_pad * tn * itemsize <= budget."""
    budget = max(128, max_tile_bytes // (n_pad * itemsize))
    tn = max(128, (min(budget, n_pad) // 128) * 128)
    while n_pad % tn:
        tn -= 128
    return tn


def attention_score_forward(x, edge_index, weight, bias,
                            *, max_tile_bytes=8 * 1024 * 1024):
    """score = D^-1/2 (A+I) D^-1/2 @ (x @ W^T) + b; hot path in one Pallas kernel.

    x: [N, C] f32, edge_index: [2, E] i32, weight: [1, C] f32 (PyG layout),
    bias: [1] f32.  Returns [N, 1] f32.
    """
    n, c = x.shape
    a_hat_t = build_normalized_adjacency_T(edge_index, n)

    n_pad = _round_up(n, 128)
    tn = _choose_col_tile(n_pad, 2, max_tile_bytes)           # bf16 A_hat^T stream
    grid = (n_pad // tn,)

    a_t = (jnp.zeros((n_pad, n_pad), jnp.float32)
           .at[:n, :n].set(a_hat_t)
           .astype(jnp.bfloat16))                             # streamed tensor -> bf16
    x_t = jnp.zeros((c, n_pad), jnp.float32).at[:, :n].set(x.T)
    w8 = jnp.broadcast_to(weight.reshape(1, c).astype(jnp.float32), (8, c))
    b = jnp.reshape(bias, (1,)).astype(jnp.float32)

    flops = 2 * 8 * n_pad * n_pad + 2 * 8 * c * n_pad * grid[0]
    bytes_accessed = 2 * n_pad * n_pad + 4 * c * n_pad + 4 * 8 * c + 4 * n_pad

    out = pl.pallas_call(
        _gcn_score_kernel,
        out_shape=jax.ShapeDtypeStruct((1, n_pad), jnp.float32),
        grid=grid,
        in_specs=[
            pl.BlockSpec((8, c), lambda j: (0, 0)),             # weight (resident)
            pl.BlockSpec((c, n_pad), lambda j: (0, 0)),         # x^T    (resident)
            pl.BlockSpec((n_pad, tn), lambda j: (0, j)),        # A_hat^T column tile
            pl.BlockSpec(memory_space=pltpu.MemorySpace.SMEM),  # bias scalar
        ],
        out_specs=pl.BlockSpec((1, tn), lambda j: (0, j)),      # lane-dense scores
        compiler_params=pltpu.CompilerParams(
            dimension_semantics=("parallel",)),
        cost_estimate=pl.CostEstimate(flops=flops, transcendentals=0,
                                      bytes_accessed=bytes_accessed),
    )(w8, x_t, a_t, b)

    # TODO(synk): for very large N also tile the reduction (row) axis with an f32
    # VMEM accumulator + pl.when init/finalize, and long-term replace the dense
    # O(N^2) A_hat with a CSR scalar-prefetch gather (sparse SpMV) kernel.
    return out[0, :n].reshape(n, 1)


# -------------------------------- main ------------------------------------- #
if __name__ == "__main__":
    key = jax.random.PRNGKey(0)
    k_x, k_w, k_e = jax.random.split(key, 3)

    num_nodes = 200      # N (non-multiple of 128 to exercise padding)
    in_channels = 32     # C
    num_edges = 600      # E

    x = jax.random.normal(k_x, (num_nodes, in_channels), dtype=jnp.float32)
    edge_index = jax.random.randint(k_e, (2, num_edges), 0, num_nodes,
                                    dtype=jnp.int32)

    # GCNConv parameters: weight [out=1, in=C] (glorot-style), bias zero-init.
    limit = (6.0 / (in_channels + 1)) ** 0.5
    weight = jax.random.uniform(k_w, (1, in_channels), dtype=jnp.float32,
                                minval=-limit, maxval=limit)
    bias = jnp.zeros((1,), dtype=jnp.float32)

    # Small tile budget so the demo exercises the multi-tile / pipelined path
    # (grid > 1); the default 8 MiB-per-buffer budget is the production setting.
    score = attention_score_forward(x, edge_index, weight, bias,
                                    max_tile_bytes=64 * 1024)
    score = jax.block_until_ready(score)

    # Correctness: compare against a bf16-quantization-matched pure-JAX reference,
    # so the check isolates kernel/tiling correctness from the intended bf16 stream.
    a_hat_t = build_normalized_adjacency_T(edge_index, num_nodes)
    a_q = a_hat_t.astype(jnp.bfloat16).astype(jnp.float32)
    xw_q = (x @ weight.T).astype(jnp.bfloat16).astype(jnp.float32)   # (N, 1)
    ref = a_q.T @ xw_q + bias.reshape(1, 1)

    assert score.shape == (num_nodes, 1)
    assert jnp.allclose(score, ref, atol=1e-2, rtol=1e-2), "mismatch vs reference"

    print("KERNEL_OK")
</pallas_src>

<mosaic_0001>
module attributes {stable_mosaic.version = 11 : i64} {
  func.func @_gcn_score_kernel(%arg0: i32, %arg1: memref<8x32xf32, #tpu.memory_space<vmem>>, %arg2: memref<32x256xf32, #tpu.memory_space<vmem>>, %arg3: memref<256x128xbf16, #tpu.memory_space<vmem>>, %arg4: memref<1xf32, #tpu.memory_space<smem>>, %arg5: memref<1x128xf32, #tpu.memory_space<vmem>>) attributes {dimension_semantics = [#tpu.dimension_semantics<parallel>], iteration_bounds = array<i64: 2>, scalar_prefetch = 0 : i64, scratch_operands = 0 : i64, tpu.core_type = #tpu.core_type<tc>, window_params = [{pipeline_mode = #tpu.pipeline_mode<synchronous>, transform_indices = @transform_0, window_bounds = array<i64: 8, 32>}, {pipeline_mode = #tpu.pipeline_mode<synchronous>, transform_indices = @transform_1, window_bounds = array<i64: 32, 256>}, {transform_indices = @transform_2, window_bounds = array<i64: 256, 128>}, {transform_indices = @transform_3, window_bounds = array<i64: 1>}, {transform_indices = @transform_4, window_bounds = array<i64: 1, 128>}]} {
    %c0 = arith.constant 0 : index
    %c0_0 = arith.constant 0 : index
    %0 = vector.load %arg1[%c0, %c0_0] : memref<8x32xf32, #tpu.memory_space<vmem>>, vector<8x32xf32>
    %c0_1 = arith.constant 0 : index
    %c0_2 = arith.constant 0 : index
    %1 = vector.load %arg2[%c0_1, %c0_2] : memref<32x256xf32, #tpu.memory_space<vmem>>, vector<32x256xf32>
    %cst = arith.constant dense<0.000000e+00> : vector<8x256xf32>
    %2 = tpu.matmul %0, %1, %cst {dimension_numbers = #tpu.dot_dimension_numbers<[1], [0], [0], [1], [0, 0, 1, 1], [], []>} : vector<8x32xf32>, vector<32x256xf32>, vector<8x256xf32> -> vector<8x256xf32>
    %3 = arith.truncf %2 : vector<8x256xf32> to vector<8x256xbf16>
    %c0_3 = arith.constant 0 : index
    %c0_4 = arith.constant 0 : index
    %4 = vector.load %arg3[%c0_3, %c0_4] : memref<256x128xbf16, #tpu.memory_space<vmem>>, vector<256x128xbf16>
    %cst_5 = arith.constant dense<0.000000e+00> : vector<8x128xf32>
    %5 = tpu.matmul %3, %4, %cst_5 {dimension_numbers = #tpu.dot_dimension_numbers<[1], [0], [0], [1], [0, 0, 1, 1], [], []>} : vector<8x256xbf16>, vector<256x128xbf16>, vector<8x128xf32> -> vector<8x128xf32>
    %6 = vector.extract_strided_slice %5 {offsets = [0, 0], sizes = [1, 128], strides = [1, 1]} : vector<8x128xf32> to vector<1x128xf32>
    %c0_6 = arith.constant 0 : index
    %7 = memref.load %arg4[%c0_6] : memref<1xf32, #tpu.memory_space<smem>>
    %8 = vector.broadcast %7 : f32 to vector<1x128xf32>
    %9 = arith.addf %6, %8 : vector<1x128xf32>
    %c0_7 = arith.constant 0 : index
    %c0_8 = arith.constant 0 : index
    %10 = vector.load %arg5[%c0_7, %c0_8] : memref<1x128xf32, #tpu.memory_space<vmem>>, vector<1x128xf32>
    tpu.vector_store %arg5[%c0_7, %c0_8], %9 {strides = array<i32>} : memref<1x128xf32, #tpu.memory_space<vmem>>, vector<1x128xf32>,
    return
  }
  func.func @transform_0(%arg0: i32) -> (i32, i32) {
    %c0_i32 = arith.constant 0 : i32
    %c0_i32_0 = arith.constant 0 : i32
    %c0_i32_1 = arith.constant 0 : i32
    return %c0_i32, %c0_i32_0 : i32, i32
  }
  func.func @transform_1(%arg0: i32) -> (i32, i32) {
    %c0_i32 = arith.constant 0 : i32
    %c0_i32_0 = arith.constant 0 : i32
    %c0_i32_1 = arith.constant 0 : i32
    return %c0_i32, %c0_i32_0 : i32, i32
  }
  func.func @transform_2(%arg0: i32) -> (i32, i32) {
    %c0_i32 = arith.constant 0 : i32
    %c0_i32_0 = arith.constant 0 : i32
    return %c0_i32, %arg0 : i32, i32
  }
  func.func @transform_3(%arg0: i32) -> i32 {
    %c0_i32 = arith.constant 0 : i32
    %c0_i32_0 = arith.constant 0 : i32
    return %c0_i32 : i32
  }
  func.func @transform_4(%arg0: i32) -> (i32, i32) {
    %c0_i32 = arith.constant 0 : i32
    %c0_i32_0 = arith.constant 0 : i32
    return %c0_i32, %arg0 : i32, i32
  }
}

</mosaic_0001>

<bundles_post_ra>
// kernel: tpu_custom_call.1
= control target key start
LH: loop header
LB: loop body
LE: loop exit
PB: predicated region body
PF: predicated region fallthrough
CT: control target
= control target key end

     0   :  { %s1200_s0 = inlined_call_operand.hbm [shape: f32[8,32], index: 0, kind: input, shape index: {}]   ;;  %s1201_s1 = inlined_call_operand.hbm [shape: f32[32,256], index: 1, kind: input, shape index: {}]   ;;  %s1202_s2 = inlined_call_operand.hbm [shape: bf16[256,256], index: 2, kind: input, shape index: {}]   ;;  %s1203_s3 = inlined_call_operand.<no memory space> [shape: f32[1], index: 3, kind: input, shape index: {}]   ;;  %s1204_s4 = inlined_call_operand.hbm [shape: f32[1,256], index: 4, kind: output, shape index: {}]  }
   0x1   :  { %9 = sst [smem:[#allocation2]] %s1203_s3 }
   0x2   :  { %10 = vsyncpa [#allocation4], 0 }
   0x3   :  { %11 = vsyncpa [#allocation7], 0 }
   0x4   :  { %12 = vsyncpa [#allocation5], 0 }
   0x5   :  { %14 = vsyncpa [#allocation5 + $0x1], 0  ;;  %s947_s17 = smov 0   ;;  %s949_s18 = smov 0  }
   0x6   :  { %s951_s19 = smov 0   ;;  %s953_s20 = smov 0  }
   0x7 LB: > { %s968_s3 = sadd.s32 4294967295, %s907_s20   ;;  %s597_s21 = sadd.s32 4294967294, %s907_s20   ;;  %s907_s20 = sphi %s953_s20, %s1231_s20   ;;  %s903_s19 = sphi %s951_s19, %s1230_s19   ;;  %s899_s18 = sphi %s949_s18, %s1229_s18   ;;  %s895_s17 = sphi %s947_s17, %s1228_s17  }
   0x8   : > { %s972_s22 = sadd.s32 1, %s907_s20   ;;  %s69_s23 = sadd.s32 1, %s903_s19 }
   0x9   : > { %s66_s24 = ssub.s32 %s907_s20, %s972_s22  ;;  %p76_p0 = scmp.ne.s32.totalorder %s903_s19, %s899_s18 }
   0xa   : > { %p67_p1 = scmp.eq.s32.totalorder %s66_s24, 0  ;;  %p77_p2 = scmp.eq.s32.totalorder %s907_s20, 0 }
   0xb   : > { %p82_p3 = scmp.ne.s32.totalorder %s899_s18, %s895_s17  ;;  %p1205_p4 = scmp.eq.s32.totalorder %s968_s3, 0 }
   0xc   : > { %s984_s25 = scalar_select %p67_p1, %s903_s19, %s69_s23  }
   0xd   : > { %p986_p5 = por %p77_p2, %p76_p0  ;;  %p992_p6 = por %p1205_p4, %p82_p3 }
   0xe   : > { %p127_p7 = scmp.eq.s32.totalorder %s968_s3, 1  ;;  %p133_p8 = scmp.eq.s32.totalorder %s597_s21, 1 }
   0xf   : > { %s1211_s27 = scalar_select %p992_p6, 1, 0 }
  0x10   : > { %p598_p9 = scmp.ge.s32.totalorder %s907_s20, 1  ;;  %p140_p10 = scmp.lt.s32.totalorder %s907_s20, 3 }
  0x11   : > { %p999_p11 = por %p127_p7, %p76_p0  ;;  %p1003_p12 = por %p133_p8, %p82_p3 }
  0x12   : > { %p1007_p13 = pnand %p598_p9, %p140_p10  ;;  %s909_s5 = smov [#allocation3]  }
  0x13   : > { %s1212_s28 = scalar_select %p999_p11, 1, 0 }
  0x14   : > { %s1213_s29 = scalar_select %p1003_p12, 1, 0 }
  0x15   : > { %s1214_s30 = scalar_select %p1007_p13, 1, 0 }
  0x16   : > { %p670_p2 = pneg %p1007_p13  ;;  %s153_s6 = sshll.u32 %s909_s5, 4  ;;  %s154_s6 = int_to_ptr.vmem [resolvable:$true] %s153_s6 }
  0x17   : > { %p687_p4 = scmp.lt.s32.totalorder %s907_s20, 2  ;;  %p1215_p0 = scmp.eq.s32.totalorder %s968_s3, 0 }
  0x18   : > { %s910_s9 = smov [#allocation6]   ;;  %s747_s13 = scalar_lea.hbm %s1200_s0, 128 }
  0x19   : > { %p1017_p7 = pnand %p670_p2, %p1215_p0  ;;  %p1023_p3 = pnand %p687_p4, %p986_p5 }
  0x1a   : > { %s163_s10 = sshll.u32 %s910_s9, 4  ;;  %p748_p8 = scmp.ne.s32.totalorder %s1200_s0, %s747_s13  ;;  %s1027_s10 = int_to_ptr.vmem [resolvable:$true] %s163_s10 }
  0x1b   : > { %s1217_s8 = scalar_select %p1023_p3, 1, 0 }
  0x1c   : > { %p749_p9 = pneg %p1017_p7  ;;  %p754_p10 = scmp.lt.u32.totalorder %s747_s13, %s1200_s0 }
  0x1e   : > { %p750_p4 = pnand %p749_p9, %p748_p8 }
  0x20   : > { %p751_p5 = pneg %p750_p4 }
  0x22   : > { %p756_p2 = pnand %p754_p10, %p751_p5 }
  0x24   : > { %759 = shalt.err (!%p756_p2)
}
  0x25   : > { %s760_s23 = scalar_lea.vmem %s154_s6, 128  ;;  %p768_p11 = scmp.lt.s32.totalorder %s154_s6, %s154_s6 }
  0x26   : > { %p761_p0 = scmp.ne.s32.totalorder %s154_s6, %s760_s23  ;;  %p769_p6 = scmp.lt.s32.totalorder %s760_s23, %s760_s23 }
  0x28   : > { %p763_p1 = pnand %p761_p0, %p749_p9  ;;  %p770_p13 = por %p769_p6, %p768_p11 }
  0x2a   : > { %p764_p12 = pneg %p763_p1 }
  0x2c   : > { %p771_p3 = pnand %p770_p13, %p764_p12 }
  0x2e   : > { %774 = shalt.err (!%p771_p3)
}
  0x2f   : > { %673 = dma.hbm_to_vmem [thread:$0]  (!%p1017_p7), %s1200_s0, 128, %s154_s6, [#allocation4]  }
  0x30   : > { %s180_s5 = sand.u32 1, %s907_s20   ;;  %s775_s12 = scalar_lea.hbm %s1201_s1, 1024 }
  0x31   : > { %p776_p1 = scmp.ne.s32.totalorder %s1201_s1, %s775_s12  ;;  %p782_p12 = scmp.lt.u32.totalorder %s775_s12, %s1201_s1 }
  0x33   : > { %p778_p6 = pnand %p776_p1, %p749_p9 }
  0x35   : > { %p779_p11 = pneg %p778_p6 }
  0x37   : > { %p784_p13 = pnand %p782_p12, %p779_p11 }
  0x39   : > { %787 = shalt.err (!%p784_p13)
}
  0x3a   : > { %s788_s6 = scalar_lea.vmem %s1027_s10, 1024  ;;  %p796_p5 = scmp.lt.s32.totalorder %s1027_s10, %s1027_s10 }
  0x3b   : > { %p789_p3 = scmp.ne.s32.totalorder %s1027_s10, %s788_s6  ;;  %p797_p10 = scmp.lt.s32.totalorder %s788_s6, %s788_s6 }
  0x3d   : > { %p791_p8 = pnand %p789_p3, %p749_p9  ;;  %p798_p2 = por %p797_p10, %p796_p5 }
  0x3f   : > { %p792_p4 = pneg %p791_p8 }
  0x41   : > { %p799_p0 = pnand %p798_p2, %p792_p4 }
  0x43   : > { %802 = shalt.err (!%p799_p0)
}
  0x44   : > { %s911_s21 = smov 256   ;;  %s912_s23 = smov 16  }
  0x45   : > { %676 = dma.hbm_to_vmem [thread:$0]  (!%p1017_p7), %s1201_s1, 1024, %s1027_s10, [#allocation7], %s911_s21, %s911_s21, %s912_s23  }
  0x46   : > { %s182_s9 = sand.u32 1, %s903_s19   ;;  %s603_s12 = sshll.u32 %s907_s20, 6 }
  0x47   : > { %s602_s11 = sshll.u32 %s182_s9, 7  ;;  %s1082_s15 = scalar_lea.hbm %s1202_s2, %s603_s12 }
  0x48   : > { %s184_s16 = scalar_lea.vmem [#allocation8], %s602_s11  ;;  %s1086_s7 = scalar_lea.sflag [#allocation4], %s180_s5 }
  0x49   : > { %s190_s6 = sshll.u32 %s184_s16, 4  ;;  %s803_s24 = scalar_lea.hbm %s1082_s15, 2048  ;;  %s1084_s6 = int_to_ptr.vmem [resolvable:$true] %s190_s6 }
  0x4a   : > { %p804_p7 = scmp.ne.s32.totalorder %s1082_s15, %s803_s24  ;;  %p1218_p9 = scmp.ne.s32.totalorder %s1217_s8, 0 }
  0x4b   : > { %s808_s23 = scalar_lea.hbm %s1202_s2, 4096  ;;  %p809_p12 = scmp.lt.u32.totalorder %s1082_s15, %s1202_s2 }
  0x4c   : > { %p805_p1 = pneg %p1218_p9  ;;  %p810_p13 = scmp.lt.u32.totalorder %s808_s23, %s803_s24 }
  0x4d   : > { %p812_p8 = scmp.lt.u32.totalorder %s803_s24, %s1082_s15 }
  0x4e   : > { %p806_p6 = pnand %p805_p1, %p804_p7  ;;  %p811_p3 = por %p810_p13, %p809_p12 }
  0x50   : > { %p807_p11 = pneg %p806_p6  ;;  %p813_p4 = por %p812_p8, %p811_p3 }
  0x52   : > { %p814_p5 = pnand %p813_p4, %p807_p11 }
  0x54   : > { %817 = shalt.err (!%p814_p5)
}
  0x55   : > { %s818_s5 = scalar_lea.vmem %s1084_s6, 2048  ;;  %s913_s11 = smov [#allocation8]  }
  0x56   : > { %p819_p10 = scmp.ne.s32.totalorder %s1084_s6, %s818_s5  ;;  %s823_s12 = sshll.u32 %s913_s11, 4  ;;  %s824_s12 = int_to_ptr.vmem [resolvable:$false] %s823_s12 }
  0x57   : > { %s825_s13 = scalar_lea.vmem %s824_s12, 4096  ;;  %p826_p7 = scmp.lt.s32.totalorder %s1084_s6, %s824_s12 }
  0x58   : > { %p821_p2 = pnand %p819_p10, %p805_p1  ;;  %p827_p6 = scmp.lt.s32.totalorder %s825_s13, %s818_s5 }
  0x5a   : > { %p822_p0 = pneg %p821_p2  ;;  %p828_p12 = por %p827_p6, %p826_p7 }
  0x5c   : > { %p829_p13 = pnand %p828_p12, %p822_p0 }
  0x5e   : > { %832 = shalt.err (!%p829_p13)
}
  0x5f   : > { %s914_s14 = smov 128   ;;  %s915_s16 = smov 64  }
  0x60   : > { %s916_s24 = smov 4   ;;  %p1219_p1 = scmp.ne.s32.totalorder %s1214_s30, 0 }
  0x61   : > { %680 = dma.hbm_to_vmem [thread:$0]  (!%p1218_p9), %s1082_s15, 2048, %s1084_s6, %s1086_s7, %s914_s14, %s915_s16, %s916_s24  }
  0x62   : > { %202 = sbr.rel (%p1219_p1) target bundleno = 573 (0x23d), region = 36  ;;  %p1220_p11 = scmp.eq.s32.totalorder (!%p1219_p1), %s968_s3, 0 }
  0x69   : > { %878 = dma.done.wait (%p1220_p11), [#allocation4], 128   ;;  %p1221_p3 = pmov %p1220_p11 }
  0x6b   : > { %880 = vsyncadd (%p1221_p3), [#allocation4], 4294967168  ;;  %p1222_p8 = pmov %p1221_p3 }
  0x6c   : > { %p1223_p4 = pmov %p1221_p3 }
  0x6d   : > { %882 = dma.done.wait (%p1222_p8), [#allocation7], 1024  }
  0x6e   : > { %884 = vsyncadd (%p1223_p4), [#allocation7], 4294966272  ;;  %s212_s8 = sand.u32 1, %s968_s3   ;;  %s1126_s15 = sand.u32 1, %s899_s18  }
  0x6f   : > { %s607_s30 = sshll.u32 %s1126_s15, 7  ;;  %s213_s6 = scalar_lea.sflag [#allocation4], %s212_s8 }
  0x70   : > { %s1129_s7 = scalar_lea.vmem [#allocation8], %s607_s30  ;;  %p1224_p9 = scmp.ne.s32.totalorder %s1211_s27, 0 }
  0x72   : > { %886 = dma.done.wait (%p1224_p9), %s213_s6, 2048  }
  0x73   : > { %888 = vsyncadd (%p1224_p9), %s213_s6, 4294965248  ;;  %v917_v0 = vmov 0.0   ;;  %v243_v1 = vld [vmem:[#allocation6 + $0x8] sm:$0xff]  ;;  %v245_v2 = vld [vmem:[#allocation6 + $0x18] sm:$0xff]  ;;  %vm250_vm0 = vcmask 261120   ;;  %s495_s27 = sld [smem:[#allocation2]] }
  0x74   : > { %318 = vmatprep.mubr.f32.mxu0 %v917_v0  ;;  %v242_v3 = vld [vmem:[#allocation6] sm:$0xff]  ;;  %v650_v4 = vpack.c.bf16 %v245_v2, %v243_v1  ;;  %v244_v5 = vld [vmem:[#allocation6 + $0x10] sm:$0xff]  ;;  %v247_v6 = vld [vmem:[#allocation6 + $0x28] sm:$0xff]  ;;  %s625_s10 = sshll.u32 %s968_s3, 4  ;;  %s239_s21 = scalar_lea.vmem [#allocation9], %s1126_s15 }
  0x75   : > { %v249_v7 = vld [vmem:[#allocation6 + $0x38] sm:$0xff]  ;;  %v652_v8 = vpack.c.bf16 %v244_v5, %v242_v3  ;;  %v246_v10 = vld [vmem:[#allocation6 + $0x20] sm:$0xff]  ;;  %v248_v11 = vld [vmem:[#allocation6 + $0x30] sm:$0xff]  ;;  %s512_s23 = sshll.u32 %s239_s21, 4  ;;  %s1156_s5 = scalar_lea.hbm %s1204_s4, %s625_s10  ;;  %s1158_s23 = int_to_ptr.vmem [resolvable:$true] %s512_s23 }
  0x76   : > { %v654_v9 = vpack.c.bf16 %v249_v7, %v247_v6  ;;  %651 = vmatprep.subr.bf16.mxu0 %v650_v4  ;;  %v731_v12 = vld [vmem:[%s1129_s7 + $0x40] sm:$0xff]   ;;  %v656_v13 = vpack.c.bf16 %v248_v11, %v246_v10  ;;  %v733_v15 = vld [vmem:[%s1129_s7 + $0x48] sm:$0xff]   ;;  %v735_v17 = vld [vmem:[%s1129_s7 + $0x50] sm:$0xff]   ;;  %s500_s11 = scalar_lea.sflag [#allocation5], %s1126_s15  ;;  %s833_s12 = scalar_lea.vmem %s1158_s23, 16 }
  0x77   : > { %653 = vmatpush1.bf16.msra.mxu0 %v652_v8  ;;  %v732_v14 = vld [vmem:[%s1129_s7] sm:$0xff]   ;;  %628 = vmatprep.subr.bf16.mxu1 %v731_v12  ;;  %v734_v16 = vld [vmem:[%s1129_s7 + $0x8] sm:$0xff]   ;;  %v241_v18 = vld [vmem:[#allocation3] sm:$0xff]  ;;  %p834_p5 = scmp.ne.s32.totalorder %s1158_s23, %s833_s12  ;;  %p1225_p10 = scmp.ne.s32.totalorder %s1212_s28, 0 }
  0x78   : > { %655 = vmatprep.subr.bf16.mxu0 %v654_v9  ;;  %629 = vmatpush3.bf16.msra.mxu1 %v732_v14  ;;  %v736_v19 = vld [vmem:[%s1129_s7 + $0x10] sm:$0xff]   ;;  %v737_v20 = vld [vmem:[%s1129_s7 + $0x58] sm:$0xff]   ;;  %v739_v22 = vld [vmem:[%s1129_s7 + $0x60] sm:$0xff]   ;;  %s918_s3 = smov [#allocation9]  }
  0x79   : > { %630 = vmatprep.subr.bf16.mxu1 %v733_v15  ;;  %v738_v21 = vld [vmem:[%s1129_s7 + $0x18] sm:$0xff]   ;;  %v740_v23 = vld [vmem:[%s1129_s7 + $0x20] sm:$0xff]   ;;  %v741_v24 = vld [vmem:[%s1129_s7 + $0x68] sm:$0xff]   ;;  %v496_v36 = vstv %s495_s27  ;;  %p835_p2 = pnand %p834_p5, %p1225_p10  ;;  %s837_s13 = sshll.u32 %s918_s3, 4  ;;  %s838_s13 = int_to_ptr.vmem [resolvable:$false] %s837_s13 }
  0x7a   : > { %v742_v25 = vld [vmem:[%s1129_s7 + $0x28] sm:$0xff]   ;;  %v743_v26 = vld [vmem:[%s1129_s7 + $0x70] sm:$0xff]   ;;  %v745_v28 = vld [vmem:[%s1129_s7 + $0x78] sm:$0xff]   ;;  %s839_s14 = scalar_lea.vmem %s838_s13, 32  ;;  %p840_p7 = scmp.lt.s32.totalorder %s1158_s23, %s838_s13 }
  0x7b   : > { %657 = vmatpush1.bf16.msra.mxu0 %v656_v13  ;;  %v744_v27 = vld [vmem:[%s1129_s7 + $0x30] sm:$0xff]   ;;  %v746_v29 = vld [vmem:[%s1129_s7 + $0x38] sm:$0xff]   ;;  %p836_p0 = pneg %p835_p2  ;;  %p841_p6 = scmp.lt.s32.totalorder %s839_s14, %s833_s12 }
  0x7c   : > { %631 = vmatpush3.bf16.msra.mxu1 %v734_v16 }
  0x7d   : > { %632 = vmatprep.subr.bf16.mxu1 %v735_v17  ;;  %p842_p12 = por %p841_p6, %p840_p7 }
  0x7e   : > { %608 = vmatmul.mubr.msk.f32.vlgmr.msra.gmra.mrb[0].mxu0 %vm250_vm0, %v241_v18 }
  0x7f   : > { %p843_p13 = pnand %p842_p12, %p836_p0 }
  0x80   : > { %633 = vmatpush3.bf16.msra.mxu1 %v736_v19 }
  0x81   : > { %634 = vmatprep.subr.bf16.mxu1 %v737_v20 }
  0x84   : > { %635 = vmatpush3.bf16.msra.mxu1 %v738_v21 }
  0x85   : > { %636 = vmatprep.subr.bf16.mxu1 %v739_v22 }
  0x88   : > { %637 = vmatpush3.bf16.msra.mxu1 %v740_v23 }
  0x89   : > { %638 = vmatprep.subr.bf16.mxu1 %v741_v24 }
  0x8c   : > { %639 = vmatpush3.bf16.msra.mxu1 %v742_v25 }
  0x8d   : > { %640 = vmatprep.subr.bf16.mxu1 %v743_v26 }
  0x90   : > { %641 = vmatpush3.bf16.msra.mxu1 %v744_v27 }
  0x91   : > { %642 = vmatprep.subr.bf16.mxu1 %v745_v28 }
  0x94   : > { %643 = vmatpush3.bf16.msra.mxu1 %v746_v29 }
 0x151   : > { %v320_v30 = vpop.f32.mrb[0].mxu0 }
 0x152   : > { %v322_v31 = vpop.f32.mrb[1].mxu0  ;;  %v325_v33 = vpack.c.bf16 %v320_v30, %v320_v30 }
 0x153   : > { %v326_v32 = vpack.c.bf16 %v322_v31, %v322_v31 }
 0x155   : > { %487 = vmatprep.mubr.bf16.mxu1 %v326_v32 }
 0x156   : > { %488 = vmatmul.mubr.bf16.vlgmr.msra.gmra.mrb[0].mxu1 %v325_v33 }
 0x229   : > { %v644_v34 = vpop.f32.mrb[0].mxu1 }
 0x22a   : > { %v645_v35 = vpop.f32.mrb[1].mxu1 }
 0x22b   : > { %v646_v37 = vadd.f32 %v645_v35, %v644_v34  ;;  %v647_v38 = vpop.f32.mrb[2].mxu1 }
 0x22c   : > { %v648_v39 = vpop.f32.mrb[3].mxu1 }
 0x22d   : > { %v497_v40 = vadd.f32 %v646_v37, %v496_v36 }
 0x22f   : > { %498 = vst [vmem:[%s239_s21] sm:$0x1] %v497_v40 }
 0x230   : > { %846 = shalt.err (!%p843_p13)
}
 0x231   : > { %s847_s16 = scalar_lea.hbm %s1156_s5, 16  ;;  %s851_s15 = scalar_lea.hbm %s1204_s4, 32 }
 0x232   : > { %p848_p1 = scmp.ne.s32.totalorder %s1156_s5, %s847_s16  ;;  %p852_p8 = scmp.lt.u32.totalorder %s1156_s5, %s1204_s4 }
 0x233   : > { %p853_p4 = scmp.lt.u32.totalorder %s851_s15, %s847_s16  ;;  %p855_p5 = scmp.lt.u32.totalorder %s847_s16, %s1156_s5 }
 0x234   : > { %p849_p11 = pnand %p848_p1, %p1225_p10 }
 0x235   : > { %p854_p9 = por %p853_p4, %p852_p8 }
 0x236   : > { %p850_p3 = pneg %p849_p11 }
 0x237   : > { %p856_p2 = por %p855_p5, %p854_p9 }
 0x239   : > { %p857_p0 = pnand %p856_p2, %p850_p3 }
 0x23b   : > { %860 = shalt.err (!%p857_p0)
}
 0x23c   : > { %668 = dma.vmem_to_hbm [thread:$0]  (%p1225_p10), %s1158_s23, 16, %s1156_s5, %s500_s11  }
 0x23d PF: > { %s524_s7 = sand.u32 1, %s895_s17   ;;  %p1226_p7 = scmp.ne.s32.totalorder %s1213_s29, 0 }
 0x23e   : > { %p1227_p6 = scmp.ge.s32.totalorder %s907_s20, 2  ;;  %s525_s27 = scalar_lea.sflag [#allocation5], %s524_s7 }
 0x240   : > { %p682_p12 = pnand %p1227_p6, %p1226_p7 }
 0x242   : > { %890 = dma.done.wait (!%p682_p12), %s525_s27, 16  }
 0x243   : > { %892 = vsyncadd (!%p682_p12), %s525_s27, 4294967280  ;;  %p17_p13 = scmp.ge.s32.totalorder %s972_s22, 4   ;;  %s1228_s17 = smov %s899_s18 }
 0x244   : > { %s1229_s18 = smov %s903_s19  ;;  %s1230_s19 = smov %s984_s25 }
 0x245   : > { %s1231_s20 = smov %s972_s22  ;;  %19 = sbr.rel (!%p17_p13) target bundleno = 7 (0x7), region = 88 }
 0x24c   :  { %529 = vsyncpa [#allocation4], 1 }
 0x24d   :  { %531 = vsyncpa [#allocation4 + $0x1], 1 }
 0x24e   :  { %532 = vsyncpa [#allocation7], 1 }
 0x24f   :  { %533 = vsyncpa [#allocation5], 1 }
 0x250   :  { %535 = vsyncpa [#allocation5 + $0x1], 1 }

</bundles_post_ra>
